<compile_context>
chip_gen: v7x
topology: tpu7x:2x2x1
jax: 0.10.0
libtpu: 0.0.40
codegen_flags: <defaults>
</compile_context>

<pallas_src>
import functools

import jax
import jax.numpy as jnp
from jax.experimental import pallas as pl
from jax.experimental.pallas import tpu as pltpu

# sigmoid(x) > 0.2  <=>  x > log(0.2/0.8) = -log(4)
_NEG_LOG4 = -1.3862943611198906


def _erf(z):
    # Abramowitz & Stegun 7.1.26 rational approximation (max abs err ~1.5e-7)
    # standing in for torch's exact erf-based F.gelu.  The divide goes to the
    # EUP via approx reciprocal (~2^-12 rel err, well inside 1e-3 tolerance).
    a1, a2, a3, a4, a5 = (0.254829592, -0.284496736, 1.421413741,
                          -1.453152027, 1.061405429)
    p = 0.3275911
    s = jnp.where(z >= 0.0, 1.0, -1.0)
    za = jnp.abs(z)
    t = pl.reciprocal(1.0 + p * za, approx=True)
    poly = ((((a5 * t + a4) * t + a3) * t + a2) * t + a1) * t
    return s * (1.0 - poly * jnp.exp(-za * za))


def _gelu_exact(v):
    return 0.5 * v * (1.0 + _erf(v * 0.7071067811865476))


def mff_kernel(x_ref, w1_ref, b1_ref, mw_ref, bdw_ref,
               wsca_ref, bsca_ref, wout_ref, bout_ref, o_ref, *, img_w):
    _, C, HW = x_ref.shape
    Chid = w1_ref.shape[1]

    x = x_ref[0].astype(jnp.float32)              # (C, HW) — one image per step

    # ---- hoisted (tiny) parameter loads: one vld each, indexed as values ----
    w1 = w1_ref[...]                              # (C, Chid, 1)
    b1 = b1_ref[...]                              # (Chid, 1)
    mw = mw_ref[...]                              # (9, Chid, HW) mask-folded taps
    bdw = bdw_ref[...]                            # (Chid, 1)
    wsca = wsca_ref[...]                          # (C, Chid, 1)
    bsca = bsca_ref[...]                          # (Chid, 1)
    wout = wout_ref[...]                          # (Chid, C, 1)
    bout = bout_ref[...]                          # (C, 1)

    # ---- dwconv branch, 1x1 conv (C -> Chid): VPU broadcast FMAs ----
    y = x[0:1, :] * w1[0]                         # (1,HW)*(Chid,1) -> (Chid,HW)
    for ci in range(1, C):
        y = y + x[ci:ci + 1, :] * w1[ci]
    y = y + b1                                    # (Chid, HW)

    # ---- depthwise 3x3, padding=1: lane rolls, masks pre-folded into taps ----
    acc = y * mw[4]                               # center tap (no shift)
    t = 0
    for dh in (-1, 0, 1):
        for dwd in (-1, 0, 1):
            s = dh * img_w + dwd
            if s != 0:
                sh = pltpu.roll(y, shift=(-s) % HW, axis=1)   # sh[p] = y[p+s]
                acc = acc + sh * mw[t]
            t += 1
    xd = acc + bdw                                # (Chid, HW)

    # ---- sca branch: spatial mean (lane reduce) + 1x1 conv as FMAs ----
    xmean = jnp.sum(x, axis=1, keepdims=True) * (1.0 / HW)    # (C, 1)
    sca = xmean[0:1, :] * wsca[0]
    for ci in range(1, C):
        sca = sca + xmean[ci:ci + 1, :] * wsca[ci]
    sca = sca + bsca                              # (Chid, 1)

    # ---- bc branch: one shared exp for sigmoid + ELU, divides on the EUP ----
    e = jnp.exp(-jnp.abs(x))                      # exp(-|x|), single EUP exp
    inv1pe = pl.reciprocal(1.0 + e, approx=True)
    sig = jnp.where(x >= 0.0, 1.0, e) * inv1pe    # sigmoid(x)
    # ELU(alpha=1): exp(x)-1 for x<=0 (== e-1 there).  exp-1 instead of expm1
    # (guaranteed Mosaic lowering); abs err ~1e-7, negligible at tolerance.
    m2 = jnp.where(x > 0.0, x, e - 1.0)
    # Threshold on x (== sigmoid(x) > 0.2) so the approx reciprocal cannot
    # flip the branch decision relative to the exact reference.
    m1 = jnp.where(x > _NEG_LOG4, 2.0 * sig, 0.0)
    xb = m1 * m2

    # ---- fuse, channel scale, project_out (1x1 conv as FMAs), residual ----
    xdb = _gelu_exact(xd) * xb                    # Chid == C assumed
    x1 = xdb * sca                                # (Chid,HW) * (Chid,1)
    x2 = x1[0:1, :] * wout[0]
    for k in range(1, Chid):
        x2 = x2 + x1[k:k + 1, :] * wout[k]
    x2 = x2 + bout                                # (C, HW)
    o_ref[0] = (x + x2).astype(o_ref.dtype)


def mff_forward(x_nchw, params):
    N, C, H, W = x_nchw.shape
    Chid = params["w1"].shape[1]
    assert Chid == C, "MFF forward requires hidden_features == dim"
    HW = H * W

    # NCHW -> (N, C, H*W): channel-major already, so this is a free reshape.
    x3 = x_nchw.reshape(N, C, HW)

    # Broadcast-ready parameter layouts (channel on the sublane axis).
    w1b = params["w1"][:, :, None]                 # (C, Chid, 1)
    b1b = params["b1"].reshape(Chid, 1)            # (Chid, 1)
    dwb = params["dw"][:, :, None]                 # (9, Chid, 1)
    bdwb = params["bdw"].reshape(Chid, 1)          # (Chid, 1)
    wscab = params["wsca"][:, :, None]             # (C, Chid, 1)
    bscab = params["bsca"].reshape(Chid, 1)        # (Chid, 1)
    woutb = params["wout"][:, :, None]             # (Chid, C, 1)
    boutb = params["bout"].reshape(C, 1)           # (C, 1)

    # Zero-padding validity masks for the 9 depthwise taps (flattened spatial),
    # folded into the tap weights once so the in-kernel tap loop is a single
    # FMA per tap.
    hh = jnp.arange(HW, dtype=jnp.int32) // W
    ww = jnp.arange(HW, dtype=jnp.int32) % W
    masks = []
    for dh in (-1, 0, 1):
        for dwd in (-1, 0, 1):
            mh = (hh + dh >= 0) & (hh + dh < H)
            mv = (ww + dwd >= 0) & (ww + dwd < W)
            masks.append((mh & mv).astype(jnp.float32))
    mask9 = jnp.stack(masks).reshape(9, 1, HW)
    mw9 = mask9 * dwb                              # (9, Chid, HW) masked taps
    # TODO(synk): for production H*W, fold masks in-kernel per row-strip (and
    # tile the spatial axis into sublane-dense (rows, W) strips with a 1-row
    # halo, sized for v7x's 64 MiB VMEM) instead of shipping a Chid-times
    # larger mask array from HBM.

    kernel = functools.partial(mff_kernel, img_w=W)

    # grid=(N,) "parallel": per-image blocks, megacore-shardable on v7x; the
    # parameter blocks keep a constant block index so they stay resident.
    out = pl.pallas_call(
        kernel,
        out_shape=jax.ShapeDtypeStruct((N, C, HW), x_nchw.dtype),
        grid=(N,),
        in_specs=[
            pl.BlockSpec((1, C, HW), lambda n: (n, 0, 0)),     # x (one image)
            pl.BlockSpec((C, Chid, 1), lambda n: (0, 0, 0)),   # w1 columns
            pl.BlockSpec((Chid, 1), lambda n: (0, 0)),         # b1
            pl.BlockSpec((9, Chid, HW), lambda n: (0, 0, 0)),  # masked dw taps
            pl.BlockSpec((Chid, 1), lambda n: (0, 0)),         # depthwise bias
            pl.BlockSpec((C, Chid, 1), lambda n: (0, 0, 0)),   # sca weight cols
            pl.BlockSpec((Chid, 1), lambda n: (0, 0)),         # sca bias
            pl.BlockSpec((Chid, C, 1), lambda n: (0, 0, 0)),   # project_out cols
            pl.BlockSpec((C, 1), lambda n: (0, 0)),            # project_out bias
        ],
        out_specs=pl.BlockSpec((1, C, HW), lambda n: (n, 0, 0)),
        compiler_params=pltpu.CompilerParams(
            dimension_semantics=("parallel",)),
    )(x3, w1b, b1b, mw9, bdwb, wscab, bscab, woutb, boutb)
    return out.reshape(N, C, H, W)


def mff_reference(x_nchw, params):
    """Pure-JAX reference matching the PyTorch forward (for validation)."""
    x = jnp.transpose(x_nchw, (0, 2, 3, 1)).astype(jnp.float32)
    N, H, W, C = x.shape
    w1, b1 = params["w1"], params["b1"][0]
    dw, bdw = params["dw"].reshape(3, 3, -1), params["bdw"][0]
    wsca, bsca = params["wsca"], params["bsca"][0]
    wout, bout = params["wout"], params["bout"][0]
    y = jnp.einsum("nhwc,ck->nhwk", x, w1) + b1
    yp = jnp.pad(y, ((0, 0), (1, 1), (1, 1), (0, 0)))
    xd = sum(yp[:, kh:kh + H, kw:kw + W, :] * dw[kh, kw]
             for kh in range(3) for kw in range(3)) + bdw
    sca = jnp.einsum("nc,ck->nk", jnp.mean(x, axis=(1, 2)), wsca) + bsca
    m1 = jax.nn.sigmoid(x)
    m2 = jnp.where(x > 0.0, x, jnp.expm1(jnp.minimum(x, 0.0)))
    m1 = jnp.where(m1 > 0.2, 2.0 * m1, 0.0)
    xb = m1 * m2
    xdb = jax.nn.gelu(xd, approximate=False) * xb
    x1 = xdb * sca[:, None, None, :]
    x2 = jnp.einsum("nhwk,kc->nhwc", x1, wout) + bout
    return jnp.transpose(x + x2, (0, 3, 1, 2))


if __name__ == "__main__":
    # dim=4, ffn_expansion_factor=1 (hidden == dim, required by forward), bias=True
    N, C, H, W = 2, 4, 16, 16
    Chid = int(C * 1)
    key = jax.random.PRNGKey(0)
    ks = jax.random.split(key, 9)
    x = jax.random.normal(ks[0], (N, C, H, W), jnp.float32)
    params = {
        "w1":   0.3 * jax.random.normal(ks[1], (C, Chid), jnp.float32),
        "b1":   0.1 * jax.random.normal(ks[2], (1, Chid), jnp.float32),
        "dw":   0.3 * jax.random.normal(ks[3], (9, Chid), jnp.float32),
        "bdw":  0.1 * jax.random.normal(ks[4], (1, Chid), jnp.float32),
        "wsca": 0.3 * jax.random.normal(ks[5], (C, Chid), jnp.float32),
        "bsca": 0.1 * jax.random.normal(ks[6], (1, Chid), jnp.float32),
        "wout": 0.3 * jax.random.normal(ks[7], (Chid, C), jnp.float32),
        "bout": 0.1 * jax.random.normal(ks[8], (1, C), jnp.float32),
    }
    # TODO(synk): self.conv1 / self.LN are defined in __init__ but never used in forward(); not implemented.
    out = jax.block_until_ready(mff_forward(x, params))
    ref = jax.block_until_ready(mff_reference(x, params))
    assert out.shape == x.shape
    if not jnp.allclose(out, ref, atol=1e-3, rtol=1e-3):
        raise AssertionError("Pallas MFF output mismatches pure-JAX reference")
    print("KERNEL_OK")
</pallas_src>

<mosaic_0001>
module attributes {stable_mosaic.version = 11 : i64} {
  func.func @mff_kernel(%arg0: i32, %arg1: memref<1x4x256xf32, #tpu.memory_space<vmem>>, %arg2: memref<4x4x1xf32, #tpu.memory_space<vmem>>, %arg3: memref<4x1xf32, #tpu.memory_space<vmem>>, %arg4: memref<9x4x256xf32, #tpu.memory_space<vmem>>, %arg5: memref<4x1xf32, #tpu.memory_space<vmem>>, %arg6: memref<4x4x1xf32, #tpu.memory_space<vmem>>, %arg7: memref<4x1xf32, #tpu.memory_space<vmem>>, %arg8: memref<4x4x1xf32, #tpu.memory_space<vmem>>, %arg9: memref<4x1xf32, #tpu.memory_space<vmem>>, %arg10: memref<1x4x256xf32, #tpu.memory_space<vmem>>) attributes {dimension_semantics = [#tpu.dimension_semantics<parallel>], iteration_bounds = array<i64: 2>, scalar_prefetch = 0 : i64, scratch_operands = 0 : i64, tpu.core_type = #tpu.core_type<tc>, window_params = [{transform_indices = @transform_0, window_bounds = array<i64: 1, 4, 256>}, {pipeline_mode = #tpu.pipeline_mode<synchronous>, transform_indices = @transform_1, window_bounds = array<i64: 4, 4, 1>}, {pipeline_mode = #tpu.pipeline_mode<synchronous>, transform_indices = @transform_2, window_bounds = array<i64: 4, 1>}, {pipeline_mode = #tpu.pipeline_mode<synchronous>, transform_indices = @transform_3, window_bounds = array<i64: 9, 4, 256>}, {pipeline_mode = #tpu.pipeline_mode<synchronous>, transform_indices = @transform_4, window_bounds = array<i64: 4, 1>}, {pipeline_mode = #tpu.pipeline_mode<synchronous>, transform_indices = @transform_5, window_bounds = array<i64: 4, 4, 1>}, {pipeline_mode = #tpu.pipeline_mode<synchronous>, transform_indices = @transform_6, window_bounds = array<i64: 4, 1>}, {pipeline_mode = #tpu.pipeline_mode<synchronous>, transform_indices = @transform_7, window_bounds = array<i64: 4, 4, 1>}, {pipeline_mode = #tpu.pipeline_mode<synchronous>, transform_indices = @transform_8, window_bounds = array<i64: 4, 1>}, {transform_indices = @transform_9, window_bounds = array<i64: 1, 4, 256>}]} {
    %c0 = arith.constant 0 : index
    %c0_0 = arith.constant 0 : index
    %c0_1 = arith.constant 0 : index
    %0 = vector.load %arg1[%c0, %c0_0, %c0_1] : memref<1x4x256xf32, #tpu.memory_space<vmem>>, vector<1x4x256xf32>
    %1 = vector.shape_cast %0 : vector<1x4x256xf32> to vector<4x256xf32>
    %c0_2 = arith.constant 0 : index
    %c0_3 = arith.constant 0 : index
    %c0_4 = arith.constant 0 : index
    %2 = vector.load %arg2[%c0_2, %c0_3, %c0_4] : memref<4x4x1xf32, #tpu.memory_space<vmem>>, vector<4x4x1xf32>
    %c0_5 = arith.constant 0 : index
    %c0_6 = arith.constant 0 : index
    %3 = vector.load %arg3[%c0_5, %c0_6] : memref<4x1xf32, #tpu.memory_space<vmem>>, vector<4x1xf32>
    %c0_7 = arith.constant 0 : index
    %c0_8 = arith.constant 0 : index
    %c0_9 = arith.constant 0 : index
    %4 = vector.load %arg4[%c0_7, %c0_8, %c0_9] : memref<9x4x256xf32, #tpu.memory_space<vmem>>, vector<9x4x256xf32>
    %c0_10 = arith.constant 0 : index
    %c0_11 = arith.constant 0 : index
    %5 = vector.load %arg5[%c0_10, %c0_11] : memref<4x1xf32, #tpu.memory_space<vmem>>, vector<4x1xf32>
    %c0_12 = arith.constant 0 : index
    %c0_13 = arith.constant 0 : index
    %c0_14 = arith.constant 0 : index
    %6 = vector.load %arg6[%c0_12, %c0_13, %c0_14] : memref<4x4x1xf32, #tpu.memory_space<vmem>>, vector<4x4x1xf32>
    %c0_15 = arith.constant 0 : index
    %c0_16 = arith.constant 0 : index
    %7 = vector.load %arg7[%c0_15, %c0_16] : memref<4x1xf32, #tpu.memory_space<vmem>>, vector<4x1xf32>
    %c0_17 = arith.constant 0 : index
    %c0_18 = arith.constant 0 : index
    %c0_19 = arith.constant 0 : index
    %8 = vector.load %arg8[%c0_17, %c0_18, %c0_19] : memref<4x4x1xf32, #tpu.memory_space<vmem>>, vector<4x4x1xf32>
    %c0_20 = arith.constant 0 : index
    %c0_21 = arith.constant 0 : index
    %9 = vector.load %arg9[%c0_20, %c0_21] : memref<4x1xf32, #tpu.memory_space<vmem>>, vector<4x1xf32>
    %10 = vector.extract_strided_slice %1 {offsets = [0, 0], sizes = [1, 256], strides = [1, 1]} : vector<4x256xf32> to vector<1x256xf32>
    %11 = vector.extract_strided_slice %2 {offsets = [0, 0, 0], sizes = [1, 4, 1], strides = [1, 1, 1]} : vector<4x4x1xf32> to vector<1x4x1xf32>
    %12 = vector.shape_cast %11 : vector<1x4x1xf32> to vector<4x1xf32>
    %13 = vector.broadcast %10 : vector<1x256xf32> to vector<4x256xf32>
    %14 = vector.broadcast %12 : vector<4x1xf32> to vector<4x256xf32>
    %15 = arith.mulf %13, %14 : vector<4x256xf32>
    %16 = vector.extract_strided_slice %1 {offsets = [1, 0], sizes = [1, 256], strides = [1, 1]} : vector<4x256xf32> to vector<1x256xf32>
    %17 = vector.extract_strided_slice %2 {offsets = [1, 0, 0], sizes = [1, 4, 1], strides = [1, 1, 1]} : vector<4x4x1xf32> to vector<1x4x1xf32>
    %18 = vector.shape_cast %17 : vector<1x4x1xf32> to vector<4x1xf32>
    %19 = vector.broadcast %16 : vector<1x256xf32> to vector<4x256xf32>
    %20 = vector.broadcast %18 : vector<4x1xf32> to vector<4x256xf32>
    %21 = arith.mulf %19, %20 : vector<4x256xf32>
    %22 = arith.addf %15, %21 : vector<4x256xf32>
    %23 = vector.extract_strided_slice %1 {offsets = [2, 0], sizes = [1, 256], strides = [1, 1]} : vector<4x256xf32> to vector<1x256xf32>
    %24 = vector.extract_strided_slice %2 {offsets = [2, 0, 0], sizes = [1, 4, 1], strides = [1, 1, 1]} : vector<4x4x1xf32> to vector<1x4x1xf32>
    %25 = vector.shape_cast %24 : vector<1x4x1xf32> to vector<4x1xf32>
    %26 = vector.broadcast %23 : vector<1x256xf32> to vector<4x256xf32>
    %27 = vector.broadcast %25 : vector<4x1xf32> to vector<4x256xf32>
    %28 = arith.mulf %26, %27 : vector<4x256xf32>
    %29 = arith.addf %22, %28 : vector<4x256xf32>
    %30 = vector.extract_strided_slice %1 {offsets = [3, 0], sizes = [1, 256], strides = [1, 1]} : vector<4x256xf32> to vector<1x256xf32>
    %31 = vector.extract_strided_slice %2 {offsets = [3, 0, 0], sizes = [1, 4, 1], strides = [1, 1, 1]} : vector<4x4x1xf32> to vector<1x4x1xf32>
    %32 = vector.shape_cast %31 : vector<1x4x1xf32> to vector<4x1xf32>
    %33 = vector.broadcast %30 : vector<1x256xf32> to vector<4x256xf32>
    %34 = vector.broadcast %32 : vector<4x1xf32> to vector<4x256xf32>
    %35 = arith.mulf %33, %34 : vector<4x256xf32>
    %36 = arith.addf %29, %35 : vector<4x256xf32>
    %37 = vector.broadcast %3 : vector<4x1xf32> to vector<4x256xf32>
    %38 = arith.addf %36, %37 : vector<4x256xf32>
    %39 = vector.extract_strided_slice %4 {offsets = [4, 0, 0], sizes = [1, 4, 256], strides = [1, 1, 1]} : vector<9x4x256xf32> to vector<1x4x256xf32>
    %40 = vector.shape_cast %39 : vector<1x4x256xf32> to vector<4x256xf32>
    %41 = arith.mulf %38, %40 : vector<4x256xf32>
    %c17_i32 = arith.constant 17 : i32
    %42 = tpu.dynamic_rotate %38 by %c17_i32 dim 1 : vector<4x256xf32>, i32 -> vector<4x256xf32>
    %43 = vector.extract_strided_slice %4 {offsets = [0, 0, 0], sizes = [1, 4, 256], strides = [1, 1, 1]} : vector<9x4x256xf32> to vector<1x4x256xf32>
    %44 = vector.shape_cast %43 : vector<1x4x256xf32> to vector<4x256xf32>
    %45 = arith.mulf %42, %44 : vector<4x256xf32>
    %46 = arith.addf %41, %45 : vector<4x256xf32>
    %c16_i32 = arith.constant 16 : i32
    %47 = tpu.dynamic_rotate %38 by %c16_i32 dim 1 : vector<4x256xf32>, i32 -> vector<4x256xf32>
    %48 = vector.extract_strided_slice %4 {offsets = [1, 0, 0], sizes = [1, 4, 256], strides = [1, 1, 1]} : vector<9x4x256xf32> to vector<1x4x256xf32>
    %49 = vector.shape_cast %48 : vector<1x4x256xf32> to vector<4x256xf32>
    %50 = arith.mulf %47, %49 : vector<4x256xf32>
    %51 = arith.addf %46, %50 : vector<4x256xf32>
    %c15_i32 = arith.constant 15 : i32
    %52 = tpu.dynamic_rotate %38 by %c15_i32 dim 1 : vector<4x256xf32>, i32 -> vector<4x256xf32>
    %53 = vector.extract_strided_slice %4 {offsets = [2, 0, 0], sizes = [1, 4, 256], strides = [1, 1, 1]} : vector<9x4x256xf32> to vector<1x4x256xf32>
    %54 = vector.shape_cast %53 : vector<1x4x256xf32> to vector<4x256xf32>
    %55 = arith.mulf %52, %54 : vector<4x256xf32>
    %56 = arith.addf %51, %55 : vector<4x256xf32>
    %c1_i32 = arith.constant 1 : i32
    %57 = tpu.dynamic_rotate %38 by %c1_i32 dim 1 : vector<4x256xf32>, i32 -> vector<4x256xf32>
    %58 = vector.extract_strided_slice %4 {offsets = [3, 0, 0], sizes = [1, 4, 256], strides = [1, 1, 1]} : vector<9x4x256xf32> to vector<1x4x256xf32>
    %59 = vector.shape_cast %58 : vector<1x4x256xf32> to vector<4x256xf32>
    %60 = arith.mulf %57, %59 : vector<4x256xf32>
    %61 = arith.addf %56, %60 : vector<4x256xf32>
    %c255_i32 = arith.constant 255 : i32
    %62 = tpu.dynamic_rotate %38 by %c255_i32 dim 1 : vector<4x256xf32>, i32 -> vector<4x256xf32>
    %63 = vector.extract_strided_slice %4 {offsets = [5, 0, 0], sizes = [1, 4, 256], strides = [1, 1, 1]} : vector<9x4x256xf32> to vector<1x4x256xf32>
    %64 = vector.shape_cast %63 : vector<1x4x256xf32> to vector<4x256xf32>
    %65 = arith.mulf %62, %64 : vector<4x256xf32>
    %66 = arith.addf %61, %65 : vector<4x256xf32>
    %c241_i32 = arith.constant 241 : i32
    %67 = tpu.dynamic_rotate %38 by %c241_i32 dim 1 : vector<4x256xf32>, i32 -> vector<4x256xf32>
    %68 = vector.extract_strided_slice %4 {offsets = [6, 0, 0], sizes = [1, 4, 256], strides = [1, 1, 1]} : vector<9x4x256xf32> to vector<1x4x256xf32>
    %69 = vector.shape_cast %68 : vector<1x4x256xf32> to vector<4x256xf32>
    %70 = arith.mulf %67, %69 : vector<4x256xf32>
    %71 = arith.addf %66, %70 : vector<4x256xf32>
    %c240_i32 = arith.constant 240 : i32
    %72 = tpu.dynamic_rotate %38 by %c240_i32 dim 1 : vector<4x256xf32>, i32 -> vector<4x256xf32>
    %73 = vector.extract_strided_slice %4 {offsets = [7, 0, 0], sizes = [1, 4, 256], strides = [1, 1, 1]} : vector<9x4x256xf32> to vector<1x4x256xf32>
    %74 = vector.shape_cast %73 : vector<1x4x256xf32> to vector<4x256xf32>
    %75 = arith.mulf %72, %74 : vector<4x256xf32>
    %76 = arith.addf %71, %75 : vector<4x256xf32>
    %c239_i32 = arith.constant 239 : i32
    %77 = tpu.dynamic_rotate %38 by %c239_i32 dim 1 : vector<4x256xf32>, i32 -> vector<4x256xf32>
    %78 = vector.extract_strided_slice %4 {offsets = [8, 0, 0], sizes = [1, 4, 256], strides = [1, 1, 1]} : vector<9x4x256xf32> to vector<1x4x256xf32>
    %79 = vector.shape_cast %78 : vector<1x4x256xf32> to vector<4x256xf32>
    %80 = arith.mulf %77, %79 : vector<4x256xf32>
    %81 = arith.addf %76, %80 : vector<4x256xf32>
    %82 = vector.broadcast %5 : vector<4x1xf32> to vector<4x256xf32>
    %83 = arith.addf %81, %82 : vector<4x256xf32>
    %cst = arith.constant dense<0.000000e+00> : vector<4xf32>
    %84 = vector.multi_reduction <add>, %1, %cst [1] : vector<4x256xf32> to vector<4xf32>
    %85 = vector.shape_cast %84 : vector<4xf32> to vector<4x1xf32>
    %cst_22 = arith.constant 3.906250e-03 : f32
    %86 = vector.broadcast %cst_22 : f32 to vector<4x1xf32>
    %87 = arith.mulf %85, %86 : vector<4x1xf32>
    %88 = vector.extract_strided_slice %87 {offsets = [0, 0], sizes = [1, 1], strides = [1, 1]} : vector<4x1xf32> to vector<1x1xf32>
    %89 = vector.extract_strided_slice %6 {offsets = [0, 0, 0], sizes = [1, 4, 1], strides = [1, 1, 1]} : vector<4x4x1xf32> to vector<1x4x1xf32>
    %90 = vector.shape_cast %89 : vector<1x4x1xf32> to vector<4x1xf32>
    %91 = vector.broadcast %88 : vector<1x1xf32> to vector<4x1xf32>
    %92 = arith.mulf %91, %90 : vector<4x1xf32>
    %93 = vector.extract_strided_slice %87 {offsets = [1, 0], sizes = [1, 1], strides = [1, 1]} : vector<4x1xf32> to vector<1x1xf32>
    %94 = vector.extract_strided_slice %6 {offsets = [1, 0, 0], sizes = [1, 4, 1], strides = [1, 1, 1]} : vector<4x4x1xf32> to vector<1x4x1xf32>
    %95 = vector.shape_cast %94 : vector<1x4x1xf32> to vector<4x1xf32>
    %96 = vector.broadcast %93 : vector<1x1xf32> to vector<4x1xf32>
    %97 = arith.mulf %96, %95 : vector<4x1xf32>
    %98 = arith.addf %92, %97 : vector<4x1xf32>
    %99 = vector.extract_strided_slice %87 {offsets = [2, 0], sizes = [1, 1], strides = [1, 1]} : vector<4x1xf32> to vector<1x1xf32>
    %100 = vector.extract_strided_slice %6 {offsets = [2, 0, 0], sizes = [1, 4, 1], strides = [1, 1, 1]} : vector<4x4x1xf32> to vector<1x4x1xf32>
    %101 = vector.shape_cast %100 : vector<1x4x1xf32> to vector<4x1xf32>
    %102 = vector.broadcast %99 : vector<1x1xf32> to vector<4x1xf32>
    %103 = arith.mulf %102, %101 : vector<4x1xf32>
    %104 = arith.addf %98, %103 : vector<4x1xf32>
    %105 = vector.extract_strided_slice %87 {offsets = [3, 0], sizes = [1, 1], strides = [1, 1]} : vector<4x1xf32> to vector<1x1xf32>
    %106 = vector.extract_strided_slice %6 {offsets = [3, 0, 0], sizes = [1, 4, 1], strides = [1, 1, 1]} : vector<4x4x1xf32> to vector<1x4x1xf32>
    %107 = vector.shape_cast %106 : vector<1x4x1xf32> to vector<4x1xf32>
    %108 = vector.broadcast %105 : vector<1x1xf32> to vector<4x1xf32>
    %109 = arith.mulf %108, %107 : vector<4x1xf32>
    %110 = arith.addf %104, %109 : vector<4x1xf32>
    %111 = arith.addf %110, %7 : vector<4x1xf32>
    %112 = math.absf %1 : vector<4x256xf32>
    %cst_23 = arith.constant 0.000000e+00 : f32
    %113 = vector.broadcast %cst_23 : f32 to vector<4x256xf32>
    %114 = arith.subf %113, %112 : vector<4x256xf32>
    %115 = math.exp %114 : vector<4x256xf32>
    %cst_24 = arith.constant 1.000000e+00 : f32
    %116 = vector.broadcast %cst_24 : f32 to vector<4x256xf32>
    %117 = arith.addf %116, %115 : vector<4x256xf32>
    %118 = tpu.reciprocal %117 {approx = true} : vector<4x256xf32> -> vector<4x256xf32>
    %cst_25 = arith.constant 0.000000e+00 : f32
    %119 = vector.broadcast %cst_25 : f32 to vector<4x256xf32>
    %120 = arith.cmpf oge, %1, %119 : vector<4x256xf32>
    %cst_26 = arith.constant 1.000000e+00 : f32
    %121 = vector.broadcast %cst_26 : f32 to vector<4x256xf32>
    %122 = arith.select %120, %121, %115 : vector<4x256xi1>, vector<4x256xf32>
    %123 = arith.mulf %122, %118 : vector<4x256xf32>
    %cst_27 = arith.constant 0.000000e+00 : f32
    %124 = vector.broadcast %cst_27 : f32 to vector<4x256xf32>
    %125 = arith.cmpf ogt, %1, %124 : vector<4x256xf32>
    %cst_28 = arith.constant 1.000000e+00 : f32
    %126 = vector.broadcast %cst_28 : f32 to vector<4x256xf32>
    %127 = arith.subf %115, %126 : vector<4x256xf32>
    %128 = arith.select %125, %1, %127 : vector<4x256xi1>, vector<4x256xf32>
    %cst_29 = arith.constant -1.38629436 : f32
    %129 = vector.broadcast %cst_29 : f32 to vector<4x256xf32>
    %130 = arith.cmpf ogt, %1, %129 : vector<4x256xf32>
    %cst_30 = arith.constant 2.000000e+00 : f32
    %131 = vector.broadcast %cst_30 : f32 to vector<4x256xf32>
    %132 = arith.mulf %131, %123 : vector<4x256xf32>
    %cst_31 = arith.constant 0.000000e+00 : f32
    %133 = vector.broadcast %cst_31 : f32 to vector<4x256xf32>
    %134 = arith.select %130, %132, %133 : vector<4x256xi1>, vector<4x256xf32>
    %135 = arith.mulf %134, %128 : vector<4x256xf32>
    %cst_32 = arith.constant 5.000000e-01 : f32
    %136 = vector.broadcast %cst_32 : f32 to vector<4x256xf32>
    %137 = arith.mulf %136, %83 : vector<4x256xf32>
    %cst_33 = arith.constant 0.707106769 : f32
    %138 = vector.broadcast %cst_33 : f32 to vector<4x256xf32>
    %139 = arith.mulf %83, %138 : vector<4x256xf32>
    %cst_34 = arith.constant 0.000000e+00 : f32
    %140 = vector.broadcast %cst_34 : f32 to vector<4x256xf32>
    %141 = arith.cmpf oge, %139, %140 : vector<4x256xf32>
    %cst_35 = arith.constant 1.000000e+00 : f32
    %cst_36 = arith.constant -1.000000e+00 : f32
    %142 = vector.broadcast %cst_35 : f32 to vector<4x256xf32>
    %143 = vector.broadcast %cst_36 : f32 to vector<4x256xf32>
    %144 = arith.select %141, %142, %143 : vector<4x256xi1>, vector<4x256xf32>
    %145 = math.absf %139 : vector<4x256xf32>
    %cst_37 = arith.constant 0.327591091 : f32
    %146 = vector.broadcast %cst_37 : f32 to vector<4x256xf32>
    %147 = arith.mulf %146, %145 : vector<4x256xf32>
    %cst_38 = arith.constant 1.000000e+00 : f32
    %148 = vector.broadcast %cst_38 : f32 to vector<4x256xf32>
    %149 = arith.addf %148, %147 : vector<4x256xf32>
    %150 = tpu.reciprocal %149 {approx = true} : vector<4x256xf32> -> vector<4x256xf32>
    %cst_39 = arith.constant 1.06140542 : f32
    %151 = vector.broadcast %cst_39 : f32 to vector<4x256xf32>
    %152 = arith.mulf %151, %150 : vector<4x256xf32>
    %cst_40 = arith.constant -1.45315206 : f32
    %153 = vector.broadcast %cst_40 : f32 to vector<4x256xf32>
    %154 = arith.addf %152, %153 : vector<4x256xf32>
    %155 = arith.mulf %154, %150 : vector<4x256xf32>
    %cst_41 = arith.constant 1.42141378 : f32
    %156 = vector.broadcast %cst_41 : f32 to vector<4x256xf32>
    %157 = arith.addf %155, %156 : vector<4x256xf32>
    %158 = arith.mulf %157, %150 : vector<4x256xf32>
    %cst_42 = arith.constant -0.284496725 : f32
    %159 = vector.broadcast %cst_42 : f32 to vector<4x256xf32>
    %160 = arith.addf %158, %159 : vector<4x256xf32>
    %161 = arith.mulf %160, %150 : vector<4x256xf32>
    %cst_43 = arith.constant 0.254829586 : f32
    %162 = vector.broadcast %cst_43 : f32 to vector<4x256xf32>
    %163 = arith.addf %161, %162 : vector<4x256xf32>
    %164 = arith.mulf %163, %150 : vector<4x256xf32>
    %cst_44 = arith.constant 0.000000e+00 : f32
    %165 = vector.broadcast %cst_44 : f32 to vector<4x256xf32>
    %166 = arith.subf %165, %145 : vector<4x256xf32>
    %167 = arith.mulf %166, %145 : vector<4x256xf32>
    %168 = math.exp %167 : vector<4x256xf32>
    %169 = arith.mulf %164, %168 : vector<4x256xf32>
    %cst_45 = arith.constant 1.000000e+00 : f32
    %170 = vector.broadcast %cst_45 : f32 to vector<4x256xf32>
    %171 = arith.subf %170, %169 : vector<4x256xf32>
    %172 = arith.mulf %144, %171 : vector<4x256xf32>
    %cst_46 = arith.constant 1.000000e+00 : f32
    %173 = vector.broadcast %cst_46 : f32 to vector<4x256xf32>
    %174 = arith.addf %173, %172 : vector<4x256xf32>
    %175 = arith.mulf %137, %174 : vector<4x256xf32>
    %176 = arith.mulf %175, %135 : vector<4x256xf32>
    %177 = vector.broadcast %111 : vector<4x1xf32> to vector<4x256xf32>
    %178 = arith.mulf %176, %177 : vector<4x256xf32>
    %179 = vector.extract_strided_slice %178 {offsets = [0, 0], sizes = [1, 256], strides = [1, 1]} : vector<4x256xf32> to vector<1x256xf32>
    %180 = vector.extract_strided_slice %8 {offsets = [0, 0, 0], sizes = [1, 4, 1], strides = [1, 1, 1]} : vector<4x4x1xf32> to vector<1x4x1xf32>
    %181 = vector.shape_cast %180 : vector<1x4x1xf32> to vector<4x1xf32>
    %182 = vector.broadcast %179 : vector<1x256xf32> to vector<4x256xf32>
    %183 = vector.broadcast %181 : vector<4x1xf32> to vector<4x256xf32>
    %184 = arith.mulf %182, %183 : vector<4x256xf32>
    %185 = vector.extract_strided_slice %178 {offsets = [1, 0], sizes = [1, 256], strides = [1, 1]} : vector<4x256xf32> to vector<1x256xf32>
    %186 = vector.extract_strided_slice %8 {offsets = [1, 0, 0], sizes = [1, 4, 1], strides = [1, 1, 1]} : vector<4x4x1xf32> to vector<1x4x1xf32>
    %187 = vector.shape_cast %186 : vector<1x4x1xf32> to vector<4x1xf32>
    %188 = vector.broadcast %185 : vector<1x256xf32> to vector<4x256xf32>
    %189 = vector.broadcast %187 : vector<4x1xf32> to vector<4x256xf32>
    %190 = arith.mulf %188, %189 : vector<4x256xf32>
    %191 = arith.addf %184, %190 : vector<4x256xf32>
    %192 = vector.extract_strided_slice %178 {offsets = [2, 0], sizes = [1, 256], strides = [1, 1]} : vector<4x256xf32> to vector<1x256xf32>
    %193 = vector.extract_strided_slice %8 {offsets = [2, 0, 0], sizes = [1, 4, 1], strides = [1, 1, 1]} : vector<4x4x1xf32> to vector<1x4x1xf32>
    %194 = vector.shape_cast %193 : vector<1x4x1xf32> to vector<4x1xf32>
    %195 = vector.broadcast %192 : vector<1x256xf32> to vector<4x256xf32>
    %196 = vector.broadcast %194 : vector<4x1xf32> to vector<4x256xf32>
    %197 = arith.mulf %195, %196 : vector<4x256xf32>
    %198 = arith.addf %191, %197 : vector<4x256xf32>
    %199 = vector.extract_strided_slice %178 {offsets = [3, 0], sizes = [1, 256], strides = [1, 1]} : vector<4x256xf32> to vector<1x256xf32>
    %200 = vector.extract_strided_slice %8 {offsets = [3, 0, 0], sizes = [1, 4, 1], strides = [1, 1, 1]} : vector<4x4x1xf32> to vector<1x4x1xf32>
    %201 = vector.shape_cast %200 : vector<1x4x1xf32> to vector<4x1xf32>
    %202 = vector.broadcast %199 : vector<1x256xf32> to vector<4x256xf32>
    %203 = vector.broadcast %201 : vector<4x1xf32> to vector<4x256xf32>
    %204 = arith.mulf %202, %203 : vector<4x256xf32>
    %205 = arith.addf %198, %204 : vector<4x256xf32>
    %206 = vector.broadcast %9 : vector<4x1xf32> to vector<4x256xf32>
    %207 = arith.addf %205, %206 : vector<4x256xf32>
    %208 = arith.addf %1, %207 : vector<4x256xf32>
    %c0_47 = arith.constant 0 : index
    %c0_48 = arith.constant 0 : index
    %c0_49 = arith.constant 0 : index
    %209 = vector.load %arg10[%c0_47, %c0_48, %c0_49] : memref<1x4x256xf32, #tpu.memory_space<vmem>>, vector<1x4x256xf32>
    %210 = vector.shape_cast %209 : vector<1x4x256xf32> to vector<4x256xf32>
    %211 = vector.shape_cast %208 : vector<4x256xf32> to vector<1x4x256xf32>
    tpu.vector_store %arg10[%c0_47, %c0_48, %c0_49], %211 {strides = array<i32>} : memref<1x4x256xf32, #tpu.memory_space<vmem>>, vector<1x4x256xf32>,
    return
  }
  func.func @transform_0(%arg0: i32) -> (i32, i32, i32) {
    %c0_i32 = arith.constant 0 : i32
    %c0_i32_0 = arith.constant 0 : i32
    %c0_i32_1 = arith.constant 0 : i32
    return %arg0, %c0_i32, %c0_i32_0 : i32, i32, i32
  }
  func.func @transform_1(%arg0: i32) -> (i32, i32, i32) {
    %c0_i32 = arith.constant 0 : i32
    %c0_i32_0 = arith.constant 0 : i32
    %c0_i32_1 = arith.constant 0 : i32
    %c0_i32_2 = arith.constant 0 : i32
    return %c0_i32, %c0_i32_0, %c0_i32_1 : i32, i32, i32
  }
  func.func @transform_2(%arg0: i32) -> (i32, i32) {
    %c0_i32 = arith.constant 0 : i32
    %c0_i32_0 = arith.constant 0 : i32
    %c0_i32_1 = arith.constant 0 : i32
    return %c0_i32, %c0_i32_0 : i32, i32
  }
  func.func @transform_3(%arg0: i32) -> (i32, i32, i32) {
    %c0_i32 = arith.constant 0 : i32
    %c0_i32_0 = arith.constant 0 : i32
    %c0_i32_1 = arith.constant 0 : i32
    %c0_i32_2 = arith.constant 0 : i32
    return %c0_i32, %c0_i32_0, %c0_i32_1 : i32, i32, i32
  }
  func.func @transform_4(%arg0: i32) -> (i32, i32) {
    %c0_i32 = arith.constant 0 : i32
    %c0_i32_0 = arith.constant 0 : i32
    %c0_i32_1 = arith.constant 0 : i32
    return %c0_i32, %c0_i32_0 : i32, i32
  }
  func.func @transform_5(%arg0: i32) -> (i32, i32, i32) {
    %c0_i32 = arith.constant 0 : i32
    %c0_i32_0 = arith.constant 0 : i32
    %c0_i32_1 = arith.constant 0 : i32
    %c0_i32_2 = arith.constant 0 : i32
    return %c0_i32, %c0_i32_0, %c0_i32_1 : i32, i32, i32
  }
  func.func @transform_6(%arg0: i32) -> (i32, i32) {
    %c0_i32 = arith.constant 0 : i32
    %c0_i32_0 = arith.constant 0 : i32
    %c0_i32_1 = arith.constant 0 : i32
    return %c0_i32, %c0_i32_0 : i32, i32
  }
  func.func @transform_7(%arg0: i32) -> (i32, i32, i32) {
    %c0_i32 = arith.constant 0 : i32
    %c0_i32_0 = arith.constant 0 : i32
    %c0_i32_1 = arith.constant 0 : i32
    %c0_i32_2 = arith.constant 0 : i32
    return %c0_i32, %c0_i32_0, %c0_i32_1 : i32, i32, i32
  }
  func.func @transform_8(%arg0: i32) -> (i32, i32) {
    %c0_i32 = arith.constant 0 : i32
    %c0_i32_0 = arith.constant 0 : i32
    %c0_i32_1 = arith.constant 0 : i32
    return %c0_i32, %c0_i32_0 : i32, i32
  }
  func.func @transform_9(%arg0: i32) -> (i32, i32, i32) {
    %c0_i32 = arith.constant 0 : i32
    %c0_i32_0 = arith.constant 0 : i32
    %c0_i32_1 = arith.constant 0 : i32
    return %arg0, %c0_i32, %c0_i32_0 : i32, i32, i32
  }
}

</mosaic_0001>

<bundles_post_ra>
// kernel: tpu_custom_call.1
= control target key start
LH: loop header
LB: loop body
LE: loop exit
PB: predicated region body
PF: predicated region fallthrough
CT: control target
= control target key end

     0   :  { %14 = vsyncpa [#allocation3], 0  ;;  %s1350_s0 = inlined_call_operand.vmem [shape: f32[2,4,256], index: 0, kind: input, shape index: {}]   ;;  %s1351_s1 = inlined_call_operand.vmem [shape: f32[4,4,1], index: 1, kind: input, shape index: {}]   ;;  %s1352_s2 = inlined_call_operand.vmem [shape: f32[4,1], index: 2, kind: input, shape index: {}]   ;;  %s1353_s3 = inlined_call_operand.vmem [shape: f32[9,4,256], index: 3, kind: input, shape index: {}]   ;;  %s1354_s4 = inlined_call_operand.vmem [shape: f32[4,1], index: 4, kind: input, shape index: {}]   ;;  %s1355_s5 = inlined_call_operand.vmem [shape: f32[4,4,1], index: 5, kind: input, shape index: {}]   ;;  %s1356_s6 = inlined_call_operand.vmem [shape: f32[4,1], index: 6, kind: input, shape index: {}]   ;;  %s1357_s7 = inlined_call_operand.vmem [shape: f32[4,4,1], index: 7, kind: input, shape index: {}]   ;;  %s1358_s8 = inlined_call_operand.vmem [shape: f32[4,1], index: 8, kind: input, shape index: {}]   ;;  %s1359_s9 = inlined_call_operand.hbm [shape: f32[2,4,256], index: 9, kind: output, shape index: {}]  }
   0x1   :  { %16 = vsyncpa [#allocation3 + $0x1], 0  ;;  %s1076_s30 = smov 0   ;;  %s1078_s10 = smov 0  }
   0x2   :  { %s1080_s11 = smov 0   ;;  %s1082_s12 = smov 0  }
   0x3 LB: > { %s1097_s13 = sadd.s32 4294967295, %s1013_s12   ;;  %s863_s14 = sadd.s32 4294967294, %s1013_s12   ;;  %s1013_s12 = sphi %s1082_s12, %s1365_s12   ;;  %s1009_s11 = sphi %s1080_s11, %s1364_s11   ;;  %s1005_s10 = sphi %s1078_s10, %s1363_s10   ;;  %s1001_s30 = sphi %s1076_s30, %s1362_s30  }
   0x4   : > { %s1101_s15 = sadd.s32 1, %s1013_s12   ;;  %s223_s16 = sadd.s32 1, %s1009_s11 }
   0x5   : > { %s220_s17 = ssub.s32 %s1013_s12, %s1101_s15  ;;  %p233_p0 = scmp.ne.s32.totalorder %s1009_s11, %s1005_s10 }
   0x6   : > { %p221_p1 = scmp.eq.s32.totalorder %s220_s17, 0  ;;  %p234_p2 = scmp.eq.s32.totalorder %s1097_s13, 1 }
   0x7   : > { %p239_p3 = scmp.ne.s32.totalorder %s1005_s10, %s1001_s30  ;;  %p240_p4 = scmp.eq.s32.totalorder %s863_s14, 1 }
   0x8   : > { %s1112_s18 = scalar_select %p221_p1, %s1009_s11, %s223_s16  }
   0x9   : > { %p1114_p5 = por %p234_p2, %p233_p0  ;;  %p1118_p6 = por %p240_p4, %p239_p3 }
   0xa   : > { %p866_p7 = scmp.ge.s32.totalorder %s1013_s12, 1  ;;  %p290_p8 = scmp.lt.s32.totalorder %s1013_s12, 3 }
   0xc   : > { %p291_p9 = pnand %p866_p7, %p290_p8 }
   0xd   : > { %v334_v0 = vld [vmem:[%s1351_s1 + $0x8] sm:$0xf] (!%p291_p9)  ;;  %v332_v1 = vld [vmem:[%s1351_s1] sm:$0xf] (!%p291_p9)  ;;  %v1015_v2 = vmov (!%p291_p9), 0   ;;  %p326_p10 = scmp.lt.s32.totalorder (!%p291_p9), %s1097_s13, 1  ;;  %v358_v11 = vlaneseq (!%p291_p9) }
   0xe   : > { %294 = sbr.rel (%p291_p9) target bundleno = 413 (0x19d), region = 56  ;;  %928 = vset.pattern.permute.xlu1 (!%p291_p9), %v1015_v2  ;;  %927 = vset.pattern.permute.xlu0 (!%p291_p9), %v1015_v2  ;;  %v335_v3 = vld [vmem:[%s1351_s1 + $0xc] sm:$0xf] (!%p291_p9)  ;;  %v333_v4 = vld [vmem:[%s1351_s1 + $0x4] sm:$0xf] (!%p291_p9)  ;;  %vm599_vm0 = vcmask (!%p291_p9), 1043456  }
   0xf   : > { %430 = vperm.xlu1 (!%p291_p9), %928, %v334_v0   ;;  %378 = vperm.xlu0 (!%p291_p9), %927, %v332_v1   ;;  %v336_v5 = vld [vmem:[%s1352_s2] sm:$0xf] (!%p291_p9)  ;;  %v359_v12 = vshrl.u32 (!%p291_p9), %v358_v11, 7  ;;  %s1016_s24 = smov (!%p291_p9), 127   ;;  %s1017_s25 = smov (!%p291_p9), 17  }
  0x10   : > { %v346_v58 = vld [vmem:[%s1354_s4] sm:$0xf] (!%p291_p9)  ;;  %s1018_s28 = smov (!%p291_p9), 111   ;;  %s1019_s29 = smov (!%p291_p9), 16   ;;  %v354_v60 = vld [vmem:[%s1357_s7 + $0x8] sm:$0xf] (!%p291_p9) }
  0x11   : > { %v1150_v13 = vsub.s32 (!%p291_p9), 0, %v359_v12  ;;  %v364_v14 = vsub.s32 (!%p291_p9), 4, %v359_v12  ;;  %v1152_v15 = vsub.s32 (!%p291_p9), 1, %v359_v12  ;;  %v389_v16 = vsub.s32 (!%p291_p9), 5, %v359_v12  ;;  %v352_v59 = vld [vmem:[%s1357_s7] sm:$0xf] (!%p291_p9) }
  0x12   : > { %v1154_v17 = vsub.s32 (!%p291_p9), 2, %v359_v12  ;;  %v416_v18 = vsub.s32 (!%p291_p9), 6, %v359_v12  ;;  %v1156_v19 = vsub.s32 (!%p291_p9), 3, %v359_v12  ;;  %v443_v20 = vsub.s32 (!%p291_p9), 7, %v359_v12  ;;  %s1020_s22 = smov (!%p291_p9), 15   ;;  %s1021_s26 = smov (!%p291_p9), 1  }
  0x13   : > { %457 = vperm.xlu1 (!%p291_p9), %928, %v335_v3   ;;  %403 = vperm.xlu0 (!%p291_p9), %927, %v333_v4   ;;  %v356_v61 = vld [vmem:[%s1358_s8] sm:$0xf] (!%p291_p9)  ;;  %s1022_s27 = smov (!%p291_p9), 113   ;;  %v348_v1 = vld [vmem:[%s1355_s5 + $0x4] sm:$0xf] (!%p291_p9) }
  0x14   : > { %v347_v63 = vld [vmem:[%s1355_s5] sm:$0xf] (!%p291_p9)  ;;  %v349_v2 = vld [vmem:[%s1355_s5 + $0x8] sm:$0xf] (!%p291_p9) }
  0x15   : > { %s327_s16 = scalar_select %p326_p10, %s1097_s13, 1 }
  0x17   : > { %466 = vperm.xlu0 %927, %v336_v5   ;;  %s876_s17 = sshll.u32 %s327_s16, 3 }
  0x18   : > { %s330_s23 = scalar_lea.vmem %s1350_s0, %s876_s17 }
  0x19   : > { %v1144_v6 = vld [vmem:[%s330_s23] sm:$0xff] }
  0x1a   : > { %v597_v7 = vcombine.high %v1144_v6, %v1144_v6  ;;  %v600_v8 = vsel %vm599_vm0, %v1144_v6, 0.0  ;;  %v361_v21 = vrot.slane %v1144_v6, %v1150_v13  ;;  %v365_v22 = vrot.slane %v1144_v6, %v364_v14 }
  0x1b   : > { %v386_v23 = vrot.slane %v1144_v6, %v1152_v15  ;;  %v390_v24 = vrot.slane %v1144_v6, %v389_v16  ;;  %v413_v25 = vrot.slane %v1144_v6, %v1154_v17  ;;  %v417_v26 = vrot.slane %v1144_v6, %v416_v18 }
  0x1c   : > { %v601_v9 = vsel %vm599_vm0, %v597_v7, 0.0  ;;  %v440_v29 = vrot.slane %v1144_v6, %v1156_v19  ;;  %v444_v30 = vrot.slane %v1144_v6, %v443_v20  ;;  %v371_v31 = vrot.slane %v361_v21, %v1150_v13  ;;  %v351_v20 = vld [vmem:[%s1356_s6] sm:$0xf] }
  0x1d   : > { %v602_v10 = vadd.f32 %v601_v9, %v600_v8  ;;  %v375_v32 = vrot.slane %v365_v22, %v1150_v13  ;;  %v396_v33 = vrot.slane %v386_v23, %v1152_v15  ;;  %v400_v34 = vrot.slane %v390_v24, %v1152_v15  ;;  %v350_v8 = vld [vmem:[%s1355_s5 + $0xc] sm:$0xf]  ;;  %v353_v23 = vld [vmem:[%s1357_s7 + $0x4] sm:$0xf] }
  0x1e   : > { %v423_v35 = vrot.slane %v413_v25, %v1154_v17  ;;  %v427_v36 = vrot.slane %v417_v26, %v1154_v17  ;;  %v450_v37 = vrot.slane %v440_v29, %v1156_v19  ;;  %v454_v38 = vrot.slane %v444_v30, %v1156_v19  ;;  %v355_v24 = vld [vmem:[%s1357_s7 + $0xc] sm:$0xf] }
  0x1f   : > { %vm636_vm9 = vcmp.ge.f32.partialorder %v1144_v6, 0.0  ;;  %vm639_vm10 = vcmp.gt.f32.partialorder %v1144_v6, 0.0  ;;  %vm642_vm11 = vcmp.gt.f32.partialorder %v1144_v6, -1.3862944 }
  0x37   : > { %603 = vadd.xlane.f32.xlu1 %v602_v10 }
  0x8e   : > { %v431_v27 = vpop.permute.xlu1 %430  ;;  %v379_v28 = vpop.permute.xlu0 %378 }
  0x8f   : > { %v381_v40 = vmul.f32 %v379_v28, %v371_v31  ;;  %v382_v41 = vmul.f32 %v379_v28, %v375_v32  ;;  %v433_v45 = vmul.f32 %v431_v27, %v423_v35  ;;  %v434_v46 = vmul.f32 %v431_v27, %v427_v36  ;;  %v341_v35 = vld [vmem:[%s1353_s3 + $0x20] sm:$0xff] }
  0x90   : > { %v1238_v32 = vand.u32 127, %v358_v11  ;;  %v472_v11 = vcombine.high %v341_v35, %v341_v35 }
  0x92   : > { %v404_v39 = vpop.permute.xlu0 %403  ;;  %v458_v44 = vpop.permute.xlu1 %457  ;;  %vm482_vm1 = vcmp.lt.s32.totalorder %v1238_v32, 17  ;;  %vm496_vm2 = vcmp.lt.s32.totalorder %v1238_v32, 16  ;;  %vm510_vm3 = vcmp.lt.s32.totalorder %v1238_v32, 15  ;;  %vm524_vm4 = vcmp.lt.s32.totalorder %v1238_v32, 1 }
  0x93   : > { %v406_v42 = vmul.f32 %v404_v39, %v396_v33  ;;  %v407_v43 = vmul.f32 %v404_v39, %v400_v34  ;;  %v460_v49 = vmul.f32 %v458_v44, %v450_v37  ;;  %v461_v50 = vmul.f32 %v458_v44, %v454_v38  ;;  %v337_v34 = vld [vmem:[%s1353_s3] sm:$0xff]  ;;  %v338_v37 = vld [vmem:[%s1353_s3 + $0x8] sm:$0xff] }
  0x94   : > { %v486_v38 = vcombine.high %v337_v34, %v337_v34  ;;  %vm538_vm5 = vcmp.lt.s32.totalorder %v1238_v32, 127  ;;  %vm552_vm6 = vcmp.lt.s32.totalorder %v1238_v32, 113  ;;  %vm566_vm7 = vcmp.lt.s32.totalorder %v1238_v32, 112 }
  0x95   : > { %v408_v47 = vadd.f32 %v406_v42, %v381_v40  ;;  %v409_v48 = vadd.f32 %v407_v43, %v382_v41  ;;  %v339_v41 = vld [vmem:[%s1353_s3 + $0x10] sm:$0xff]  ;;  %v500_v42 = vcombine.high %v338_v37, %v338_v37  ;;  %vm580_vm8 = vcmp.lt.s32.totalorder %v1238_v32, 111 }
  0x96   : > { %v467_v55 = vpop.permute.xlu0 %466 }
  0x97   : > { %v435_v51 = vadd.f32 %v433_v45, %v408_v47  ;;  %v436_v52 = vadd.f32 %v434_v46, %v409_v48  ;;  %v340_v46 = vld [vmem:[%s1353_s3 + $0x18] sm:$0xff] }
  0x99   : > { %v462_v53 = vadd.f32 %v460_v49, %v435_v51  ;;  %v463_v54 = vadd.f32 %v461_v50, %v436_v52  ;;  %v514_v49 = vcombine.high %v339_v41, %v339_v41  ;;  %v342_v50 = vld [vmem:[%s1353_s3 + $0x28] sm:$0xff] }
  0x9b   : > { %v1178_v56 = vadd.f32 %v467_v55, %v462_v53  ;;  %v1180_v57 = vadd.f32 %v467_v55, %v463_v54 }
  0x9d   : > { %536 = vrot.lane.b32.xlu1 %v1180_v57, %s1016_s24  ;;  %476 = vrot.lane.b32.xlu0 %v1178_v56, %s1017_s25  ;;  %v475_v51 = vmul.f32 %v472_v11, %v1180_v57  ;;  %v474_v52 = vmul.f32 %v1178_v56, %v341_v35 }
  0xa1   : > { %592 = vperm.xlu1 %928, %v346_v58   ;;  %478 = vrot.lane.b32.xlu0 %v1180_v57, %s1017_s25  ;;  %s1023_s25 = smov 112  }
  0xa5   : > { %578 = vrot.lane.b32.xlu1 %v1180_v57, %s1018_s28  ;;  %492 = vrot.lane.b32.xlu0 %v1178_v56, %s1019_s29 }
  0xa9   : > { %720 = vperm.xlu1 %928, %v352_v59   ;;  %494 = vrot.lane.b32.xlu0 %v1180_v57, %s1019_s29  ;;  %v528_v59 = vcombine.high %v340_v46, %v340_v46  ;;  %s877_s29 = sshll.u32 %s1097_s13, 7  ;;  %s1025_s13 = smov [#allocation2]  }
  0xaa   : > { %s1308_s21 = scalar_lea.hbm %s1359_s9, %s877_s29  ;;  %s955_s23 = sshll.u32 %s1025_s13, 4  ;;  %s956_s23 = int_to_ptr.vmem [resolvable:$false] %s955_s23 }
  0xad   : > { %752 = vperm.xlu1 %928, %v354_v60   ;;  %506 = vrot.lane.b32.xlu0 %v1178_v56, %s1020_s22  ;;  %v343_v60 = vld [vmem:[%s1353_s3 + $0x30] sm:$0xff] }
  0xb1   : > { %778 = vperm.xlu1 %928, %v356_v61   ;;  %508 = vrot.lane.b32.xlu0 %v1180_v57, %s1020_s22 }
  0xb5   : > { %520 = vrot.lane.b32.xlu0 %v1178_v56, %s1021_s26 }
  0xb9   : > { %522 = vrot.lane.b32.xlu0 %v1180_v57, %s1021_s26  ;;  %s323_s26 = sand.u32 1, %s1005_s10  }
  0xba   : > { %s790_s22 = scalar_lea.sflag [#allocation3], %s323_s26 }
  0xbd   : > { %534 = vrot.lane.b32.xlu0 %v1178_v56, %s1016_s24 }
  0xc1   : > { %548 = vrot.lane.b32.xlu0 %v1178_v56, %s1022_s27 }
  0xc4   : > { %v604_v62 = vpop.xlane.xlu1 %603 }
  0xc5   : > { %550 = vrot.lane.b32.xlu0 %v1180_v57, %s1022_s27  ;;  %v605_v0 = vmul.f32 0.00390625, %v604_v62  ;;  %s867_s27 = sshll.u32 %s323_s26, 3 }
  0xc6   : > { %s325_s14 = scalar_lea.vmem [#allocation2], %s867_s27 }
  0xc7   : > { %v609_v3 = vrot.slane %v605_v0, %v1150_v13  ;;  %v614_v4 = vrot.slane %v605_v0, %v1152_v15  ;;  %v620_v5 = vrot.slane %v605_v0, %v1154_v17  ;;  %v626_v7 = vrot.slane %v605_v0, %v1156_v19  ;;  %s804_s16 = sshll.u32 %s325_s14, 4  ;;  %s1310_s16 = int_to_ptr.vmem [resolvable:$true] %s804_s16 }
  0xc8   : > { %v542_v0 = vcombine.high %v342_v50, %v342_v50  ;;  %s951_s24 = scalar_lea.vmem %s1310_s16, 128  ;;  %p958_p0 = scmp.lt.s32.totalorder %s1310_s16, %s956_s23 }
  0xc9   : > { %v610_v9 = vmul.f32 %v609_v3, %v347_v63  ;;  %v615_v10 = vmul.f32 %v614_v4, %v348_v1  ;;  %562 = vrot.lane.b32.xlu0 %v1178_v56, %s1023_s25  ;;  %v621_v12 = vmul.f32 %v620_v5, %v349_v2  ;;  %v627_v16 = vmul.f32 %v626_v7, %v350_v8  ;;  %v344_v4 = vld [vmem:[%s1353_s3 + $0x38] sm:$0xff]  ;;  %p952_p11 = scmp.ne.s32.totalorder %s1310_s16, %s951_s24 }
  0xca   : > { %v556_v8 = vcombine.high %v343_v60, %v343_v60 }
  0xcb   : > { %v616_v14 = vadd.f32 %v615_v10, %v610_v9  ;;  %p953_p12 = pnand %p952_p11, %p1114_p5 }
  0xcd   : > { %564 = vrot.lane.b32.xlu0 %v1180_v57, %s1023_s25  ;;  %v622_v18 = vadd.f32 %v621_v12, %v616_v14  ;;  %p954_p13 = pneg %p953_p12  ;;  %s957_s25 = scalar_lea.vmem %s956_s23, 256 }
  0xce   : > { %p959_p1 = scmp.lt.s32.totalorder %s957_s25, %s951_s24 }
  0xcf   : > { %v628_v21 = vadd.f32 %v627_v16, %v622_v18 }
  0xd0   : > { %p960_p2 = por %p959_p1, %p958_p0 }
  0xd1   : > { %576 = vrot.lane.b32.xlu0 %v1178_v56, %s1018_s28  ;;  %v629_v22 = vadd.f32 %v628_v21, %v351_v20  ;;  %v570_v21 = vcombine.high %v344_v4, %v344_v4 }
  0xd2   : > { %p961_p3 = pnand %p960_p2, %p954_p13 }
  0xd5   : > { %705 = vperm.xlu0 %927, %v629_v22  }
  0xd9   : > { %735 = vperm.xlu0 %927, %v353_v23  }
  0xdd   : > { %769 = vperm.xlu0 %927, %v355_v24  }
 0x10f   : > { %v477_v25 = vpop.permute.xlu0 %476  ;;  %v537_v57 = vpop.permute.xlu1 %536 }
 0x113   : > { %v479_v26 = vpop.permute.xlu0 %478 }
 0x114   : > { %v483_v39 = vsel %vm482_vm1, %v477_v25, %v479_v26  ;;  %v484_v40 = vsel %vm482_vm1, %v479_v26, %v477_v25 }
 0x115   : > { %v488_v47 = vmul.f32 %v484_v40, %v337_v34  ;;  %v489_v48 = vmul.f32 %v486_v38, %v483_v39 }
 0x117   : > { %v493_v27 = vpop.permute.xlu0 %492  ;;  %v490_v1 = vadd.f32 %v488_v47, %v474_v52  ;;  %v491_v56 = vadd.f32 %v489_v48, %v475_v51 }
 0x11b   : > { %v495_v28 = vpop.permute.xlu0 %494 }
 0x11c   : > { %v497_v44 = vsel %vm496_vm2, %v493_v27, %v495_v28  ;;  %v498_v45 = vsel %vm496_vm2, %v495_v28, %v493_v27  ;;  %v345_v27 = vld [vmem:[%s1353_s3 + $0x40] sm:$0xff]  ;;  %v630_v28 = vand.u32 2147483647, %v1144_v6 }
 0x11d   : > { %v502_v55 = vmul.f32 %v498_v45, %v338_v37  ;;  %v503_v58 = vmul.f32 %v500_v42, %v497_v44  ;;  %v584_v37 = vcombine.high %v345_v27, %v345_v27 }
 0x11f   : > { %v507_v29 = vpop.permute.xlu0 %506  ;;  %v504_v9 = vadd.f32 %v502_v55, %v490_v1  ;;  %v505_v10 = vadd.f32 %v503_v58, %v491_v56 }
 0x120   : > { %v593_v22 = vpop.permute.xlu1 %592 }
 0x123   : > { %v509_v30 = vpop.permute.xlu0 %508 }
 0x124   : > { %v511_v53 = vsel %vm510_vm3, %v507_v29, %v509_v30  ;;  %v512_v54 = vsel %vm510_vm3, %v509_v30, %v507_v29  ;;  %v579_v42 = vpop.permute.xlu1 %578 }
 0x125   : > { %v516_v2 = vmul.f32 %v512_v54, %v339_v41  ;;  %v517_v3 = vmul.f32 %v514_v49, %v511_v53  ;;  %v631_v41 = vsub.f32 0.0, %v630_v28 }
 0x127   : > { %v521_v31 = vpop.permute.xlu0 %520  ;;  %v518_v23 = vadd.f32 %v516_v2, %v504_v9  ;;  %v519_v24 = vadd.f32 %v517_v3, %v505_v10  ;;  %v632_v52 = vmul.f32 1.442695, %v631_v41 }
 0x129   : > { %939 = vpow2.f32 %v632_v52 }
 0x12b   : > { %v523_v33 = vpop.permute.xlu0 %522 }
 0x12c   : > { %v525_v62 = vsel %vm524_vm4, %v521_v31, %v523_v33  ;;  %v526_v63 = vsel %vm524_vm4, %v523_v33, %v521_v31 }
 0x12d   : > { %v530_v12 = vmul.f32 %v526_v63, %v340_v46  ;;  %v531_v14 = vmul.f32 %v528_v59, %v525_v62 }
 0x12f   : > { %v535_v36 = vpop.permute.xlu0 %534  ;;  %v532_v29 = vadd.f32 %v530_v12, %v518_v23  ;;  %v533_v30 = vadd.f32 %v531_v14, %v519_v24 }
 0x130   : > { %v539_v5 = vsel %vm538_vm5, %v535_v36, %v537_v57  ;;  %v540_v7 = vsel %vm538_vm5, %v537_v57, %v535_v36 }
 0x131   : > { %v544_v25 = vmul.f32 %v539_v5, %v342_v50  ;;  %v545_v26 = vmul.f32 %v542_v0, %v540_v7 }
 0x133   : > { %v549_v43 = vpop.permute.xlu0 %548  ;;  %v546_v38 = vadd.f32 %v544_v25, %v532_v29  ;;  %v547_v11 = vadd.f32 %v545_v26, %v533_v30  ;;  %v940_v1 = vpop.eup %939 }
 0x134   : > { %v634_v56 = vadd.f32 1.0, %v940_v1  ;;  %v637_v24 = vsel %vm636_vm9, 1.0, %v940_v1 }
 0x137   : > { %v551_v61 = vpop.permute.xlu0 %550 }
 0x138   : > { %v553_v18 = vsel %vm552_vm6, %v549_v43, %v551_v61  ;;  %v554_v20 = vsel %vm552_vm6, %v551_v61, %v549_v43 }
 0x139   : > { %v558_v31 = vmul.f32 %v553_v18, %v343_v60  ;;  %v559_v33 = vmul.f32 %v556_v8, %v554_v20 }
 0x13b   : > { %v563_v16 = vpop.permute.xlu0 %562  ;;  %v560_v43 = vadd.f32 %v558_v31, %v546_v38  ;;  %v561_v44 = vadd.f32 %v559_v33, %v547_v11 }
 0x13f   : > { %v565_v34 = vpop.permute.xlu0 %564 }
 0x140   : > { %v567_v35 = vsel %vm566_vm7, %v563_v16, %v565_v34  ;;  %v568_v36 = vsel %vm566_vm7, %v565_v34, %v563_v16  ;;  %v870_v34 = vadd.f32 -1.0, %v940_v1 }
 0x141   : > { %v572_v39 = vmul.f32 %v567_v35, %v344_v4  ;;  %v573_v40 = vmul.f32 %v570_v21, %v568_v36 }
 0x142   : > { %v641_v41 = vsel %vm639_vm10, %v1144_v6, %v870_v34 }
 0x143   : > { %v577_v45 = vpop.permute.xlu0 %576  ;;  %v574_v48 = vadd.f32 %v572_v39, %v560_v43  ;;  %v575_v49 = vadd.f32 %v573_v40, %v561_v44 }
 0x144   : > { %v581_v46 = vsel %vm580_vm8, %v577_v45, %v579_v42  ;;  %v582_v47 = vsel %vm580_vm8, %v579_v42, %v577_v45 }
 0x145   : > { %v586_v50 = vmul.f32 %v581_v46, %v345_v27  ;;  %v587_v51 = vmul.f32 %v584_v37, %v582_v47 }
 0x147   : > { %v588_v53 = vadd.f32 %v586_v50, %v574_v48  ;;  %v589_v54 = vadd.f32 %v587_v51, %v575_v49  ;;  %v1024_v48 = vmov -1.0  }
 0x149   : > { %v1282_v32 = vadd.f32 %v593_v22, %v588_v53  ;;  %v1284_v55 = vadd.f32 %v593_v22, %v589_v54 }
 0x14b   : > { %v648_v58 = vmul.f32 0.70710677, %v1282_v32  ;;  %v649_v59 = vmul.f32 0.70710677, %v1284_v55  ;;  %v646_v53 = vmul.f32 0.5, %v1282_v32 }
 0x14d   : > { %v654_v60 = vand.u32 2147483647, %v648_v58  ;;  %v655_v61 = vand.u32 2147483647, %v649_v59  ;;  %vm650_vm12 = vcmp.ge.f32.partialorder %v648_v58, 0.0  ;;  %vm651_vm13 = vcmp.ge.f32.partialorder %v649_v59, 0.0 }
 0x14e   : > { %v652_v49 = vsel %vm650_vm12, 1.0, %v1024_v48  ;;  %v653_v50 = vsel %vm651_vm13, 1.0, %v1024_v48 }
 0x14f   : > { %v656_v62 = vmul.f32 0.3275911, %v654_v60  ;;  %v657_v63 = vmul.f32 0.3275911, %v655_v61  ;;  %v680_v2 = vsub.f32 0.0, %v654_v60  ;;  %v681_v3 = vsub.f32 0.0, %v655_v61 }
 0x151   : > { %v658_v0 = vadd.f32 1.0, %v656_v62  ;;  %v659_v57 = vadd.f32 1.0, %v657_v63  ;;  %v682_v5 = vmul.f32 %v680_v2, %v654_v60  ;;  %v683_v8 = vmul.f32 %v681_v3, %v655_v61 }
 0x152   : > { %v647_v60 = vmul.f32 0.5, %v1284_v55 }
 0x153   : > { %941 = vrcp.f32 %v658_v0  ;;  %v684_v14 = vmul.f32 1.442695, %v682_v5  ;;  %v686_v18 = vmul.f32 1.442695, %v683_v8 }
 0x154   : > { %943 = vrcp.f32 %v659_v57  ;;  %v706_v63 = vpop.permute.xlu0 %705  ;;  %v721_v57 = vpop.permute.xlu1 %720 }
 0x155   : > { %945 = vrcp.f32 %v634_v56 }
 0x156   : > { %947 = vpow2.f32 %v684_v14 }
 0x157   : > { %949 = vpow2.f32 %v686_v18 }
 0x158   : > { %v736_v3 = vpop.permute.xlu0 %735  ;;  %v753_v14 = vpop.permute.xlu1 %752 }
 0x15d   : > { %v942_v4 = vpop.eup %941 }
 0x15e   : > { %v944_v7 = vpop.eup %943  ;;  %v662_v9 = vmul.f32 1.0614054, %v942_v4 }
 0x15f   : > { %v663_v10 = vmul.f32 1.0614054, %v944_v7  ;;  %v946_v23 = vpop.eup %945 }
 0x160   : > { %v664_v12 = vadd.f32 -1.4531521, %v662_v9  ;;  %v638_v28 = vmul.f32 %v946_v23, %v637_v24  ;;  %v948_v11 = vpop.eup %947 }
 0x161   : > { %v665_v16 = vadd.f32 -1.4531521, %v663_v10  ;;  %v950_v40 = vpop.eup %949 }
 0x162   : > { %v666_v20 = vmul.f32 %v942_v4, %v664_v12  ;;  %v643_v35 = vmul.f32 2.0, %v638_v28  ;;  %v779_v28 = vpop.permute.xlu1 %778 }
 0x163   : > { %v667_v21 = vmul.f32 %v944_v7, %v665_v16 }
 0x164   : > { %v668_v22 = vadd.f32 1.4214138, %v666_v20  ;;  %v644_v42 = vsel %vm642_vm11, %v643_v35, 0.0 }
 0x165   : > { %v669_v25 = vadd.f32 1.4214138, %v667_v21  ;;  %v645_v46 = vmul.f32 %v644_v42, %v641_v41 }
 0x166   : > { %v670_v26 = vmul.f32 %v942_v4, %v668_v22 }
 0x167   : > { %v671_v27 = vmul.f32 %v944_v7, %v669_v25  ;;  %v699_v62 = vcombine.high %v645_v46, %v645_v46 }
 0x168   : > { %v672_v29 = vadd.f32 -0.28449672, %v670_v26 }
 0x169   : > { %v673_v30 = vadd.f32 -0.28449672, %v671_v27 }
 0x16a   : > { %v674_v31 = vmul.f32 %v942_v4, %v672_v29 }
 0x16b   : > { %v675_v33 = vmul.f32 %v944_v7, %v673_v30 }
 0x16c   : > { %v676_v36 = vadd.f32 0.2548296, %v674_v31 }
 0x16d   : > { %v677_v37 = vadd.f32 0.2548296, %v675_v33 }
 0x16e   : > { %v678_v38 = vmul.f32 %v942_v4, %v676_v36 }
 0x16f   : > { %v679_v39 = vmul.f32 %v944_v7, %v677_v37 }
 0x170   : > { %v688_v43 = vmul.f32 %v948_v11, %v678_v38 }
 0x171   : > { %v689_v44 = vmul.f32 %v950_v40, %v679_v39 }
 0x172   : > { %v690_v45 = vsub.f32 1.0, %v688_v43 }
 0x173   : > { %v691_v47 = vsub.f32 1.0, %v689_v44 }
 0x174   : > { %v692_v51 = vmul.f32 %v690_v45, %v652_v49 }
 0x175   : > { %v693_v52 = vmul.f32 %v691_v47, %v653_v50 }
 0x176   : > { %v694_v54 = vadd.f32 1.0, %v692_v51 }
 0x177   : > { %v695_v61 = vadd.f32 1.0, %v693_v52 }
 0x178   : > { %v696_v58 = vmul.f32 %v694_v54, %v646_v53 }
 0x179   : > { %v697_v0 = vmul.f32 %v695_v61, %v647_v60 }
 0x17a   : > { %v701_v59 = vmul.f32 %v696_v58, %v645_v46 }
 0x17b   : > { %v702_v1 = vmul.f32 %v699_v62, %v697_v0 }
 0x17c   : > { %v708_v56 = vmul.f32 %v706_v63, %v701_v59 }
 0x17d   : > { %v709_v2 = vmul.f32 %v706_v63, %v702_v1 }
 0x17e   : > { %v713_v4 = vrot.slane %v708_v56, %v1150_v13  ;;  %v728_v5 = vrot.slane %v708_v56, %v1152_v15  ;;  %v745_v32 = vrot.slane %v708_v56, %v1154_v17  ;;  %v762_v12 = vrot.slane %v708_v56, %v1156_v19 }
 0x17f   : > { %v717_v55 = vrot.slane %v709_v2, %v1150_v13  ;;  %v732_v7 = vrot.slane %v709_v2, %v1152_v15  ;;  %v749_v8 = vrot.slane %v709_v2, %v1154_v17  ;;  %v766_v20 = vrot.slane %v709_v2, %v1156_v19  ;;  %v770_v13 = vpop.permute.xlu0 %769 }
 0x180   : > { %v723_v9 = vmul.f32 %v721_v57, %v713_v4  ;;  %v738_v10 = vmul.f32 %v736_v3, %v728_v5  ;;  %v755_v22 = vmul.f32 %v753_v14, %v745_v32  ;;  %v772_v15 = vmul.f32 %v770_v13, %v762_v12 }
 0x181   : > { %v724_v16 = vmul.f32 %v721_v57, %v717_v55  ;;  %v739_v18 = vmul.f32 %v736_v3, %v732_v7  ;;  %v756_v24 = vmul.f32 %v753_v14, %v749_v8  ;;  %v773_v26 = vmul.f32 %v770_v13, %v766_v20 }
 0x182   : > { %v740_v21 = vadd.f32 %v738_v10, %v723_v9 }
 0x183   : > { %v741_v23 = vadd.f32 %v739_v18, %v724_v16 }
 0x184   : > { %v757_v25 = vadd.f32 %v755_v22, %v740_v21 }
 0x185   : > { %v758_v17 = vadd.f32 %v756_v24, %v741_v23 }
 0x186   : > { %v774_v27 = vadd.f32 %v772_v15, %v757_v25 }
 0x187   : > { %v775_v29 = vadd.f32 %v773_v26, %v758_v17 }
 0x188   : > { %v781_v30 = vadd.f32 %v779_v28, %v774_v27 }
 0x189   : > { %v782_v31 = vadd.f32 %v779_v28, %v775_v29 }
 0x18b   : > { %v785_v19 = vcombine.low %v781_v30, %v782_v31 }
 0x18d   : > { %v787_v33 = vadd.f32 %v785_v19, %v1144_v6 }
 0x18f   : > { %788 = vst [vmem:[%s325_s14] sm:$0xff] %v787_v33 }
 0x190   : > { %964 = shalt.err (!%p961_p3)
}
 0x191   : > { %s965_s26 = scalar_lea.hbm %s1308_s21, 128  ;;  %s969_s14 = scalar_lea.hbm %s1359_s9, 256 }
 0x192   : > { %p966_p4 = scmp.ne.s32.totalorder %s1308_s21, %s965_s26  ;;  %p970_p9 = scmp.lt.u32.totalorder %s1308_s21, %s1359_s9 }
 0x193   : > { %p971_p10 = scmp.lt.u32.totalorder %s969_s14, %s965_s26  ;;  %p973_p12 = scmp.lt.u32.totalorder %s965_s26, %s1308_s21 }
 0x194   : > { %p967_p7 = pnand %p966_p4, %p1114_p5 }
 0x195   : > { %p972_p11 = por %p971_p10, %p970_p9 }
 0x196   : > { %p968_p8 = pneg %p967_p7 }
 0x197   : > { %p974_p13 = por %p973_p12, %p972_p11 }
 0x199   : > { %p975_p0 = pnand %p974_p13, %p968_p8 }
 0x19b   : > { %978 = shalt.err (!%p975_p0)
}
 0x19c   : > { %878 = dma.vmem_to_hbm [thread:$0]  (%p1114_p5), %s1310_s16, 128, %s1308_s21, %s790_s22  }
 0x19d PF: > { %p884_p1 = scmp.ge.s32.totalorder %s1013_s12, 2  ;;  %s816_s24 = sand.u32 1, %s1001_s30  }
 0x19e   : > { %s817_s13 = scalar_lea.sflag [#allocation3], %s816_s24 }
 0x19f   : > { %p881_p2 = pnand %p884_p1, %p1118_p6 }
 0x1a1   : > { %996 = dma.done.wait (!%p881_p2), %s817_s13, 128  }
 0x1a2   : > { %998 = vsyncadd (!%p881_p2), %s817_s13, 4294967168  ;;  %p19_p3 = scmp.ge.s32.totalorder %s1101_s15, 4   ;;  %s1362_s30 = smov %s1005_s10 }
 0x1a3   : > { %s1363_s10 = smov %s1009_s11  ;;  %s1364_s11 = smov %s1112_s18 }
 0x1a4   : > { %s1365_s12 = smov %s1101_s15  ;;  %21 = sbr.rel (!%p19_p3) target bundleno = 3 (0x3), region = 91 }
 0x1ab   :  { %822 = vsyncpa [#allocation3], 1 }
 0x1ac   :  { %824 = vsyncpa [#allocation3 + $0x1], 1 }

</bundles_post_ra>
